<compile_context>
chip_gen: v7x
topology: tpu7x:2x2x1
jax: 0.10.0
libtpu: 0.0.40
codegen_flags: <defaults>
</compile_context>

<pallas_src>
import math
import functools

import jax
import jax.numpy as jnp
from jax.experimental import pallas as pl
from jax.experimental.pallas import tpu as pltpu

K0, K1, K2 = 0.63576, 1.8732, 1.48695


def _round_up(x, m):
    return (x + m - 1) // m * m


def _tpu_vmem_capacity_bytes():
    """Per-TensorCore VMEM capacity; conservative fallback if unavailable."""
    try:
        return int(pltpu.get_tpu_info().vmem_capacity_bytes)
    except Exception:
        return 64 * 1024 * 1024       # v7x per-TC size (smallest of v5e/v6e/v7x)


def _divisor_block(dim, target):
    """Largest multiple of 128 that divides `dim` and is <= max(target, 128)."""
    best, b = 128, 128
    top = min(dim, max(target, 128))
    while b <= top:
        if dim % b == 0:
            best = b
        b += 128
    return best


def _choose_block(dim, target):
    """Lane-aligned block <= target.  Prefer a block that divides `dim` (no
    padding); only if the best divisor is < half the target keep the large
    block and pad `dim` up to it (keeps the large-tile, lane-dense layout)."""
    best_div = _divisor_block(dim, target)
    top = min(dim, max(target, 128))
    if best_div * 2 >= top:
        return best_div
    return top


def _pad2d(a, rows, cols):
    pr, pc = rows - a.shape[0], cols - a.shape[1]
    if pr > 0 or pc > 0:
        a = jnp.pad(a, ((0, max(pr, 0)), (0, max(pc, 0))))
    return a


# ---------------------------------------------------------------------------
# KLD kernel: one pass over the f32 master weights, grid = (I-tiles, O-tiles).
# Per-step XLU work is a single sublane-axis partial reduce into a (1, bn)
# VMEM accumulator; the cross-lane reduce to a scalar happens once at the
# last grid step.  Single (1,1) scalar output -> both axes stay "arbitrary".
# ---------------------------------------------------------------------------
def vd_kld_kernel(theta_ref, ls2_ref, kld_ref, acc_ref, *, scale):
    i, j = pl.program_id(0), pl.program_id(1)

    @pl.when((i == 0) & (j == 0))
    def _():
        acc_ref[...] = jnp.zeros_like(acc_ref)

    th = theta_ref[...]
    # theta == 0 gives log(0) = -inf -> la clipped to +8 (same as PyTorch).
    la = jnp.clip(ls2_ref[...] - jnp.log(th * th), -8.0, 8.0)
    first = K0 * jax.nn.sigmoid(K1 + K2 * la)
    second = 0.5 * jnp.log1p(jnp.exp(-la))
    acc_ref[...] += jnp.sum(first - second - K0, axis=0, keepdims=True)

    @pl.when((i == pl.num_programs(0) - 1) & (j == pl.num_programs(1) - 1))
    def _():
        kld_ref[...] = -scale * jnp.sum(acc_ref[...], axis=1, keepdims=True)


# ---------------------------------------------------------------------------
# Train kernel: pure 2-matmul pipeline, grid = (B-tiles, O-tiles, K-tiles),
# K innermost ("arbitrary"); batch/output tiles are "parallel" (megacore).
# theta / exp(log_sigma2) / eps arrive pre-cast (default bf16) and pre-padded;
# exp() was hoisted to the wrapper.  f32 VMEM accumulators; finalize
# (sqrt, *eps, +bias, store) at k == last via pl.when.
# ---------------------------------------------------------------------------
def vd_train_kernel(x_ref, theta_ref, sigma2_ref, bias_ref, eps_ref,
                    out_ref, mu_acc, var_acc):
    k = pl.program_id(2)

    @pl.when(k == 0)
    def _():
        mu_acc[...] = jnp.zeros_like(mu_acc)
        var_acc[...] = jnp.zeros_like(var_acc)

    x = x_ref[...]                                       # f32 (bm, bk)
    mu_acc[...] += jnp.dot(x.astype(theta_ref.dtype), theta_ref[...],
                           preferred_element_type=jnp.float32)
    var_acc[...] += jnp.dot((x * x).astype(sigma2_ref.dtype), sigma2_ref[...],
                            preferred_element_type=jnp.float32)

    @pl.when(k == pl.num_programs(2) - 1)
    def _():
        std = jnp.sqrt(var_acc[...] + 1e-6)
        out_ref[...] = (std * eps_ref[...].astype(jnp.float32)
                        + mu_acc[...] + bias_ref[...]).astype(out_ref.dtype)


# ---------------------------------------------------------------------------
# Eval kernel: plain tiled matmul + bias (log_alpha mask hoisted + cached in
# the wrapper, weights pre-cast to matmul_dtype).
# ---------------------------------------------------------------------------
def vd_eval_kernel(x_ref, w_ref, bias_ref, out_ref, acc_ref):
    k = pl.program_id(2)

    @pl.when(k == 0)
    def _():
        acc_ref[...] = jnp.zeros_like(acc_ref)

    acc_ref[...] += jnp.dot(x_ref[...].astype(w_ref.dtype), w_ref[...],
                            preferred_element_type=jnp.float32)

    @pl.when(k == pl.num_programs(2) - 1)
    def _():
        out_ref[...] = (acc_ref[...] + bias_ref[...]).astype(out_ref.dtype)


class VariationalDropoutPallas:
    """Pallas TPU re-implementation of the PyTorch VariationalDropout layer."""

    def __init__(self, input_size, out_size, log_sigma2=-10.0, threshold=3.0,
                 key=None, matmul_dtype=jnp.bfloat16,
                 block_m=None, block_n=None, block_k=None, weight_buffers=2):
        # TODO(synk): support non-128-aligned input_size/out_size (requires a
        # pad mask in the KLD reduction).
        assert input_size % 128 == 0, "input_size must be a multiple of 128"
        assert out_size % 128 == 0, "out_size must be a multiple of 128"

        self.input_size = input_size
        self.out_size = out_size
        self.threshold = float(threshold)
        self.matmul_dtype = matmul_dtype
        self.weight_buffers = int(weight_buffers)

        # ---- per-generation tiling / VMEM budget ---------------------------
        vmem_cap = _tpu_vmem_capacity_bytes()
        big_vmem = vmem_cap >= 100 * 1024 * 1024       # v5e/v6e: 128 MiB/TC
        self.vmem_limit_bytes = int(min(vmem_cap * 3 // 4, 100 * 1024 * 1024))
        if block_m is None:
            block_m = 256
        if block_n is None:
            block_n = 1024 if big_vmem else 512        # v7x (64 MiB) stays 512
        if block_k is None:
            block_k = 1024 if big_vmem else 512
        assert block_m % 8 == 0 and block_n % 128 == 0 and block_k % 128 == 0
        self.block_m = block_m
        self.block_n = _choose_block(out_size, block_n)
        self.block_k = _choose_block(input_size, block_k)
        self.padded_out = _round_up(out_size, self.block_n)
        self.padded_in = _round_up(input_size, self.block_k)

        # ---- parameters (f32 masters, same init as the PyTorch module) -----
        if key is None:
            key = jax.random.PRNGKey(0)
        k_theta, k_bias = jax.random.split(key)
        stdv = 1.0 / math.sqrt(out_size)
        self.theta = jax.random.uniform(
            k_theta, (input_size, out_size), jnp.float32, -stdv, stdv)
        self.bias = jax.random.uniform(
            k_bias, (out_size,), jnp.float32, -stdv, stdv)
        self.log_sigma2 = jnp.full(
            (input_size, out_size), log_sigma2, jnp.float32)

        self._train_cache = None   # (theta_p, sigma2_p, bias_p) in matmul_dtype
        self._eval_cache = None    # (masked_theta_p, bias_p)

    # ------------------------------------------------------------------ #
    def invalidate_cache(self):
        self._train_cache = None
        self._eval_cache = None

    def update_parameters(self, theta=None, bias=None, log_sigma2=None):
        if theta is not None:
            self.theta = theta
        if bias is not None:
            self.bias = bias
        if log_sigma2 is not None:
            self.log_sigma2 = log_sigma2
        self.invalidate_cache()

    # ---- cached, parameter-only derived tensors (hoisted out of kernels) ---
    def _bias_padded(self):
        return _pad2d(self.bias.reshape(1, -1), 1, self.padded_out)

    def _train_weights(self):
        if self._train_cache is None:
            Ip, Op = self.padded_in, self.padded_out
            theta_p = _pad2d(self.theta, Ip, Op).astype(self.matmul_dtype)
            sigma2_p = _pad2d(jnp.exp(self.log_sigma2), Ip, Op).astype(
                self.matmul_dtype)
            self._train_cache = (theta_p, sigma2_p, self._bias_padded())
        return self._train_cache

    def _eval_weights(self):
        if self._eval_cache is None:
            la = jnp.clip(self.log_sigma2 - jnp.log(self.theta ** 2), -8.0, 8.0)
            w = jnp.where(la > self.threshold, 0.0, self.theta)
            Ip, Op = self.padded_in, self.padded_out
            w_p = _pad2d(w, Ip, Op).astype(self.matmul_dtype)
            self._eval_cache = (w_p, self._bias_padded())
        return self._eval_cache

    # ---- tiling helpers ----
    def _block_m_for(self, batch):
        if batch <= self.block_m:
            return _round_up(max(batch, 1), 8)
        return self.block_m

    def _weight_spec(self, bk, bn):
        kwargs = {}
        if self.weight_buffers > 2:   # opt-in triple buffering of weight DMAs
            kwargs["pipeline_mode"] = pl.Buffered(self.weight_buffers)
        return pl.BlockSpec((bk, bn), lambda i, j, k: (k, j), **kwargs)

    # ------------------------------------------------------------------ #
    def kld(self):
        """-sum(...)/(I*O), computed from the (unpadded) f32 master params."""
        I, O = self.input_size, self.out_size
        bk = _divisor_block(I, 512)
        bn = _divisor_block(O, 512)
        grid = (I // bk, O // bn)
        out = pl.pallas_call(
            functools.partial(vd_kld_kernel, scale=1.0 / float(I * O)),
            grid=grid,
            in_specs=[pl.BlockSpec((bk, bn), lambda i, j: (i, j)),
                      pl.BlockSpec((bk, bn), lambda i, j: (i, j))],
            out_specs=pl.BlockSpec((1, 1), lambda i, j: (0, 0)),
            out_shape=jax.ShapeDtypeStruct((1, 1), jnp.float32),
            scratch_shapes=[pltpu.VMEM((1, bn), jnp.float32)],
            compiler_params=pltpu.CompilerParams(
                # Single (1,1) scalar output is shared by all grid cells.
                dimension_semantics=("arbitrary", "arbitrary"),
                vmem_limit_bytes=self.vmem_limit_bytes),
        )(self.theta, self.log_sigma2)
        return out[0, 0]

    # ---- training forward: (out, kld) ----
    def forward_train(self, x, eps):
        B = x.shape[0]
        bm = self._block_m_for(B)
        Bp = _round_up(B, bm)
        bn, bk = self.block_n, self.block_k
        Ip, Op = self.padded_in, self.padded_out
        theta_p, sigma2_p, bias_p = self._train_weights()

        xp = _pad2d(x.astype(jnp.float32), Bp, Ip)
        # TODO(synk): optionally generate eps in-kernel (pltpu.prng_seed +
        # pltpu.stateful_normal per (i, j) tile) to drop this HBM read; kept
        # external here so results are deterministic and verifiable.
        ep = _pad2d(eps.astype(self.matmul_dtype), Bp, Op)
        grid = (Bp // bm, Op // bn, Ip // bk)

        out = pl.pallas_call(
            vd_train_kernel,
            grid=grid,
            in_specs=[
                pl.BlockSpec((bm, bk), lambda i, j, k: (i, k)),    # x (f32)
                self._weight_spec(bk, bn),                         # theta
                self._weight_spec(bk, bn),                         # exp(ls2)
                pl.BlockSpec((1, bn), lambda i, j, k: (0, j)),     # bias
                pl.BlockSpec((bm, bn), lambda i, j, k: (i, j)),    # eps
            ],
            out_specs=pl.BlockSpec((bm, bn), lambda i, j, k: (i, j)),
            out_shape=jax.ShapeDtypeStruct((Bp, Op), jnp.float32),
            scratch_shapes=[pltpu.VMEM((bm, bn), jnp.float32),     # mu acc
                            pltpu.VMEM((bm, bn), jnp.float32)],    # var acc
            compiler_params=pltpu.CompilerParams(
                dimension_semantics=("parallel", "parallel", "arbitrary"),
                vmem_limit_bytes=self.vmem_limit_bytes),
        )(xp, theta_p, sigma2_p, bias_p, ep)
        return out[:B, :self.out_size], self.kld()

    # ---- eval forward: out only ----
    def forward_eval(self, x):
        B = x.shape[0]
        bm = self._block_m_for(B)
        Bp = _round_up(B, bm)
        bn, bk = self.block_n, self.block_k
        Ip, Op = self.padded_in, self.padded_out
        w_p, bias_p = self._eval_weights()

        xp = _pad2d(x.astype(jnp.float32), Bp, Ip)
        grid = (Bp // bm, Op // bn, Ip // bk)

        out = pl.pallas_call(
            vd_eval_kernel,
            grid=grid,
            in_specs=[
                pl.BlockSpec((bm, bk), lambda i, j, k: (i, k)),    # x (f32)
                self._weight_spec(bk, bn),                         # masked theta
                pl.BlockSpec((1, bn), lambda i, j, k: (0, j)),     # bias
            ],
            out_specs=pl.BlockSpec((bm, bn), lambda i, j, k: (i, j)),
            out_shape=jax.ShapeDtypeStruct((Bp, Op), jnp.float32),
            scratch_shapes=[pltpu.VMEM((bm, bn), jnp.float32)],
            compiler_params=pltpu.CompilerParams(
                dimension_semantics=("parallel", "parallel", "arbitrary"),
                vmem_limit_bytes=self.vmem_limit_bytes),
        )(xp, w_p, bias_p)
        return out[:B, :self.out_size]


# ---------------------------------------------------------------------------
# Pure-JAX reference (same math as the PyTorch module).
# ---------------------------------------------------------------------------
def _reference(layer, x, eps):
    theta, ls2, bias = layer.theta, layer.log_sigma2, layer.bias
    la = jnp.clip(ls2 - jnp.log(theta ** 2), -8.0, 8.0)
    first = K0 * jax.nn.sigmoid(K1 + K2 * la)
    second = 0.5 * jnp.log(1.0 + jnp.exp(-la))
    kld = -jnp.sum(first - second - K0) / (layer.input_size * layer.out_size)
    mu = x @ theta
    std = jnp.sqrt((x * x) @ jnp.exp(ls2) + 1e-6)
    out_train = std * eps + mu + bias
    out_eval = x @ jnp.where(la > layer.threshold, 0.0, theta) + bias
    return out_train, kld, out_eval


if __name__ == "__main__":
    key = jax.random.PRNGKey(0)
    k_a, k_b, k_x, k_eps, k_x2, k_eps2 = jax.random.split(key, 6)

    # ---- Config A: auto per-generation tiles, bf16 weight streaming -------
    batch, insz, outsz = 16, 256, 384
    layer = VariationalDropoutPallas(insz, outsz, key=k_a)
    x = jax.random.normal(k_x, (batch, insz), jnp.float32)
    eps = jax.random.normal(k_eps, (batch, outsz), jnp.float32)

    out_tr, kld = layer.forward_train(x, eps)
    out_ev = layer.forward_eval(x)
    jax.block_until_ready((out_tr, kld, out_ev))

    ref_tr, ref_kld, ref_ev = _reference(layer, x, eps)
    assert jnp.allclose(out_tr, ref_tr, atol=5e-2, rtol=5e-2)
    assert jnp.allclose(kld, ref_kld, atol=1e-4, rtol=1e-4)       # f32-exact KLD
    assert jnp.allclose(out_ev, ref_ev, atol=5e-2, rtol=5e-2)

    # ---- Config B: f32 MXU, small forced blocks -> real (2,2,2) grid with
    # K-axis accumulation and O-dim padding (640 -> 1024); tight tolerances.
    batch2, insz2, outsz2 = 16, 256, 640
    layer2 = VariationalDropoutPallas(insz2, outsz2, key=k_b,
                                      matmul_dtype=jnp.float32,
                                      block_m=8, block_n=512, block_k=128)
    x2 = jax.random.normal(k_x2, (batch2, insz2), jnp.float32)
    eps2 = jax.random.normal(k_eps2, (batch2, outsz2), jnp.float32)

    out_tr2, kld2 = layer2.forward_train(x2, eps2)
    out_ev2 = layer2.forward_eval(x2)
    jax.block_until_ready((out_tr2, kld2, out_ev2))

    ref_tr2, ref_kld2, ref_ev2 = _reference(layer2, x2, eps2)
    assert jnp.allclose(out_tr2, ref_tr2, atol=1e-4, rtol=1e-4)
    assert jnp.allclose(kld2, ref_kld2, atol=1e-4, rtol=1e-4)
    assert jnp.allclose(out_ev2, ref_ev2, atol=1e-4, rtol=1e-4)

    # ---- Cache-invalidation path (stale eval-mask fix) ---------------------
    layer2.update_parameters(theta=layer2.theta * 1.5)
    out_ev3 = layer2.forward_eval(x2)
    jax.block_until_ready(out_ev3)
    la3 = jnp.clip(layer2.log_sigma2 - jnp.log(layer2.theta ** 2), -8.0, 8.0)
    ref_ev3 = x2 @ jnp.where(la3 > layer2.threshold, 0.0, layer2.theta) + layer2.bias
    assert jnp.allclose(out_ev3, ref_ev3, atol=1e-4, rtol=1e-4)

    print("KERNEL_OK")
</pallas_src>

<mosaic_0001>
module attributes {stable_mosaic.version = 11 : i64} {
  func.func @vd_train_kernel(%arg0: i32, %arg1: i32, %arg2: i32, %arg3: memref<16x256xf32, #tpu.memory_space<vmem>>, %arg4: memref<256x384xbf16, #tpu.memory_space<vmem>>, %arg5: memref<256x384xbf16, #tpu.memory_space<vmem>>, %arg6: memref<1x384xf32, #tpu.memory_space<vmem>>, %arg7: memref<16x384xbf16, #tpu.memory_space<vmem>>, %arg8: memref<16x384xf32, #tpu.memory_space<vmem>>, %arg9: memref<16x384xf32, #tpu.memory_space<vmem>>, %arg10: memref<16x384xf32, #tpu.memory_space<vmem>>) attributes {dimension_semantics = [#tpu.dimension_semantics<parallel>, #tpu.dimension_semantics<parallel>, #tpu.dimension_semantics<arbitrary>], iteration_bounds = array<i64: 1, 1, 1>, scalar_prefetch = 0 : i64, scratch_operands = 2 : i64, tpu.core_type = #tpu.core_type<tc>, window_params = [{transform_indices = @transform_0, window_bounds = array<i64: 16, 256>}, {transform_indices = @transform_1, window_bounds = array<i64: 256, 384>}, {transform_indices = @transform_2, window_bounds = array<i64: 256, 384>}, {transform_indices = @transform_3, window_bounds = array<i64: 1, 384>}, {transform_indices = @transform_4, window_bounds = array<i64: 16, 384>}, {transform_indices = @transform_5, window_bounds = array<i64: 16, 384>}]} {
    %c0_i32 = arith.constant 0 : i32
    %0 = arith.cmpi eq, %arg2, %c0_i32 : i32
    %1 = arith.extui %0 : i1 to i32
    %c0_i32_0 = arith.constant 0 : i32
    %2 = arith.cmpi ne, %1, %c0_i32_0 : i32
    scf.if %2 {
      %cst_17 = arith.constant 0.000000e+00 : f32
      %20 = vector.broadcast %cst_17 : f32 to vector<16x384xf32>
      %c0_18 = arith.constant 0 : index
      %c0_19 = arith.constant 0 : index
      %21 = vector.load %arg9[%c0_18, %c0_19] : memref<16x384xf32, #tpu.memory_space<vmem>>, vector<16x384xf32>
      tpu.vector_store %arg9[%c0_18, %c0_19], %20 {strides = array<i32>} : memref<16x384xf32, #tpu.memory_space<vmem>>, vector<16x384xf32>,
      %cst_20 = arith.constant 0.000000e+00 : f32
      %22 = vector.broadcast %cst_20 : f32 to vector<16x384xf32>
      %c0_21 = arith.constant 0 : index
      %c0_22 = arith.constant 0 : index
      %23 = vector.load %arg10[%c0_21, %c0_22] : memref<16x384xf32, #tpu.memory_space<vmem>>, vector<16x384xf32>
      tpu.vector_store %arg10[%c0_21, %c0_22], %22 {strides = array<i32>} : memref<16x384xf32, #tpu.memory_space<vmem>>, vector<16x384xf32>,
    } else {
    }
    %c0 = arith.constant 0 : index
    %c0_1 = arith.constant 0 : index
    %3 = vector.load %arg3[%c0, %c0_1] : memref<16x256xf32, #tpu.memory_space<vmem>>, vector<16x256xf32>
    %c0_2 = arith.constant 0 : index
    %c0_3 = arith.constant 0 : index
    %4 = vector.load %arg9[%c0_2, %c0_3] : memref<16x384xf32, #tpu.memory_space<vmem>>, vector<16x384xf32>
    %5 = arith.truncf %3 : vector<16x256xf32> to vector<16x256xbf16>
    %c0_4 = arith.constant 0 : index
    %c0_5 = arith.constant 0 : index
    %6 = vector.load %arg4[%c0_4, %c0_5] : memref<256x384xbf16, #tpu.memory_space<vmem>>, vector<256x384xbf16>
    %cst = arith.constant dense<0.000000e+00> : vector<16x384xf32>
    %7 = tpu.matmul %5, %6, %cst {dimension_numbers = #tpu.dot_dimension_numbers<[1], [0], [0], [1], [0, 0, 1, 1], [], []>} : vector<16x256xbf16>, vector<256x384xbf16>, vector<16x384xf32> -> vector<16x384xf32>
    %8 = arith.addf %4, %7 : vector<16x384xf32>
    %c0_6 = arith.constant 0 : index
    %c0_7 = arith.constant 0 : index
    %9 = vector.load %arg9[%c0_6, %c0_7] : memref<16x384xf32, #tpu.memory_space<vmem>>, vector<16x384xf32>
    tpu.vector_store %arg9[%c0_6, %c0_7], %8 {strides = array<i32>} : memref<16x384xf32, #tpu.memory_space<vmem>>, vector<16x384xf32>,
    %c0_8 = arith.constant 0 : index
    %c0_9 = arith.constant 0 : index
    %10 = vector.load %arg10[%c0_8, %c0_9] : memref<16x384xf32, #tpu.memory_space<vmem>>, vector<16x384xf32>
    %11 = arith.mulf %3, %3 : vector<16x256xf32>
    %12 = arith.truncf %11 : vector<16x256xf32> to vector<16x256xbf16>
    %c0_10 = arith.constant 0 : index
    %c0_11 = arith.constant 0 : index
    %13 = vector.load %arg5[%c0_10, %c0_11] : memref<256x384xbf16, #tpu.memory_space<vmem>>, vector<256x384xbf16>
    %cst_12 = arith.constant dense<0.000000e+00> : vector<16x384xf32>
    %14 = tpu.matmul %12, %13, %cst_12 {dimension_numbers = #tpu.dot_dimension_numbers<[1], [0], [0], [1], [0, 0, 1, 1], [], []>} : vector<16x256xbf16>, vector<256x384xbf16>, vector<16x384xf32> -> vector<16x384xf32>
    %15 = arith.addf %10, %14 : vector<16x384xf32>
    %c0_13 = arith.constant 0 : index
    %c0_14 = arith.constant 0 : index
    %16 = vector.load %arg10[%c0_13, %c0_14] : memref<16x384xf32, #tpu.memory_space<vmem>>, vector<16x384xf32>
    tpu.vector_store %arg10[%c0_13, %c0_14], %15 {strides = array<i32>} : memref<16x384xf32, #tpu.memory_space<vmem>>, vector<16x384xf32>,
    %c0_i32_15 = arith.constant 0 : i32
    %17 = arith.cmpi eq, %arg2, %c0_i32_15 : i32
    %18 = arith.extui %17 : i1 to i32
    %c0_i32_16 = arith.constant 0 : i32
    %19 = arith.cmpi ne, %18, %c0_i32_16 : i32
    scf.if %19 {
      %c0_17 = arith.constant 0 : index
      %c0_18 = arith.constant 0 : index
      %20 = vector.load %arg10[%c0_17, %c0_18] : memref<16x384xf32, #tpu.memory_space<vmem>>, vector<16x384xf32>
      %cst_19 = arith.constant 9.99999997E-7 : f32
      %21 = vector.broadcast %cst_19 : f32 to vector<16x384xf32>
      %22 = arith.addf %20, %21 : vector<16x384xf32>
      %23 = math.sqrt %22 : vector<16x384xf32>
      %c0_20 = arith.constant 0 : index
      %c0_21 = arith.constant 0 : index
      %24 = vector.load %arg7[%c0_20, %c0_21] : memref<16x384xbf16, #tpu.memory_space<vmem>>, vector<16x384xbf16>
      %25 = arith.extf %24 : vector<16x384xbf16> to vector<16x384xf32>
      %26 = arith.mulf %23, %25 : vector<16x384xf32>
      %c0_22 = arith.constant 0 : index
      %c0_23 = arith.constant 0 : index
      %27 = vector.load %arg9[%c0_22, %c0_23] : memref<16x384xf32, #tpu.memory_space<vmem>>, vector<16x384xf32>
      %28 = arith.addf %26, %27 : vector<16x384xf32>
      %c0_24 = arith.constant 0 : index
      %c0_25 = arith.constant 0 : index
      %29 = vector.load %arg6[%c0_24, %c0_25] : memref<1x384xf32, #tpu.memory_space<vmem>>, vector<1x384xf32>
      %30 = vector.broadcast %29 : vector<1x384xf32> to vector<16x384xf32>
      %31 = arith.addf %28, %30 : vector<16x384xf32>
      %c0_26 = arith.constant 0 : index
      %c0_27 = arith.constant 0 : index
      %32 = vector.load %arg8[%c0_26, %c0_27] : memref<16x384xf32, #tpu.memory_space<vmem>>, vector<16x384xf32>
      tpu.vector_store %arg8[%c0_26, %c0_27], %31 {strides = array<i32>} : memref<16x384xf32, #tpu.memory_space<vmem>>, vector<16x384xf32>,
    } else {
    }
    return
  }
  func.func @transform_0(%arg0: i32, %arg1: i32, %arg2: i32) -> (i32, i32) {
    %c0_i32 = arith.constant 0 : i32
    return %arg0, %arg2 : i32, i32
  }
  func.func @transform_1(%arg0: i32, %arg1: i32, %arg2: i32) -> (i32, i32) {
    %c0_i32 = arith.constant 0 : i32
    return %arg2, %arg1 : i32, i32
  }
  func.func @transform_2(%arg0: i32, %arg1: i32, %arg2: i32) -> (i32, i32) {
    %c0_i32 = arith.constant 0 : i32
    return %arg2, %arg1 : i32, i32
  }
  func.func @transform_3(%arg0: i32, %arg1: i32, %arg2: i32) -> (i32, i32) {
    %c0_i32 = arith.constant 0 : i32
    %c0_i32_0 = arith.constant 0 : i32
    return %c0_i32, %arg1 : i32, i32
  }
  func.func @transform_4(%arg0: i32, %arg1: i32, %arg2: i32) -> (i32, i32) {
    %c0_i32 = arith.constant 0 : i32
    return %arg0, %arg1 : i32, i32
  }
  func.func @transform_5(%arg0: i32, %arg1: i32, %arg2: i32) -> (i32, i32) {
    %c0_i32 = arith.constant 0 : i32
    return %arg0, %arg1 : i32, i32
  }
}

</mosaic_0001>

<bundles_post_ra>
// kernel: tpu_custom_call.1
= control target key start
LH: loop header
LB: loop body
LE: loop exit
PB: predicated region body
PF: predicated region fallthrough
CT: control target
= control target key end

     0   :  { %10 = vsyncpa [#allocation5], 0  ;;  %s1693_s0 = inlined_call_operand.hbm [shape: f32[16,256], index: 0, kind: input, shape index: {}]   ;;  %s1694_s1 = inlined_call_operand.hbm [shape: bf16[256,384], index: 1, kind: input, shape index: {}]   ;;  %s1695_s2 = inlined_call_operand.hbm [shape: bf16[256,384], index: 2, kind: input, shape index: {}]   ;;  %s1696_s3 = inlined_call_operand.vmem [shape: f32[1,384], index: 3, kind: input, shape index: {}]   ;;  %s1697_s4 = inlined_call_operand.hbm [shape: bf16[16,384], index: 4, kind: input, shape index: {}]   ;;  %s1698_s5 = inlined_call_operand.hbm [shape: f32[16,384], index: 5, kind: output, shape index: {}]  }
   0x1   :  { %11 = vsyncpa [#allocation8], 0 }
   0x2   :  { %12 = vsyncpa [#allocation11], 0 }
   0x3   :  { %13 = vsyncpa [#allocation6], 0  ;;  %s1491_s18 = smov [#allocation7]   ;;  %s1373_s22 = scalar_lea.hbm %s1694_s1, 6144 }
   0x4   :  { %s31_s19 = sshll.u32 %s1491_s18, 4  ;;  %p1374_p0 = scmp.ne.s32.totalorder %s1694_s1, %s1373_s22  ;;  %s32_s19 = int_to_ptr.vmem [resolvable:$true] %s31_s19 }
   0x5   :  { %p1377_p1 = scmp.lt.u32.totalorder %s1373_s22, %s1694_s1 }
   0x7   :  { %p1379_p2 = pnand %p1377_p1, %p1374_p0 }
   0x9   :  { %1382 = shalt.err (!%p1379_p2)
}
   0xa   :  { %s1383_s27 = scalar_lea.vmem %s32_s19, 6144  ;;  %p1388_p4 = scmp.lt.s32.totalorder %s32_s19, %s32_s19 }
   0xb   :  { %p1384_p3 = scmp.ne.s32.totalorder %s32_s19, %s1383_s27  ;;  %p1389_p5 = scmp.lt.s32.totalorder %s1383_s27, %s1383_s27 }
   0xd   :  { %p1390_p6 = por %p1389_p5, %p1388_p4 }
   0xf   :  { %p1391_p7 = pnand %p1390_p6, %p1384_p3 }
  0x11   :  { %1394 = shalt.err (!%p1391_p7)
}
  0x12   :  { %s1492_s28 = smov 192   ;;  %s1493_s29 = smov 12  }
  0x13   :  { %37 = dma.hbm_to_vmem [thread:$0]  %s1694_s1, 6144, %s32_s19, [#allocation8], %s1492_s28, %s1492_s28, %s1493_s29  }
  0x14   :  { %s1494_s7 = smov [#allocation4]   ;;  %s1395_s11 = scalar_lea.hbm %s1693_s0, 512 }
  0x15   :  { %s19_s8 = sshll.u32 %s1494_s7, 4  ;;  %p1396_p8 = scmp.ne.s32.totalorder %s1693_s0, %s1395_s11  ;;  %s20_s8 = int_to_ptr.vmem [resolvable:$true] %s19_s8 }
  0x16   :  { %p1399_p9 = scmp.lt.u32.totalorder %s1395_s11, %s1693_s0 }
  0x18   :  { %p1401_p10 = pnand %p1399_p9, %p1396_p8 }
  0x1a   :  { %1404 = shalt.err (!%p1401_p10)
}
  0x1b   :  { %s1405_s16 = scalar_lea.vmem %s20_s8, 512  ;;  %p1410_p12 = scmp.lt.s32.totalorder %s20_s8, %s20_s8 }
  0x1c   :  { %p1406_p11 = scmp.ne.s32.totalorder %s20_s8, %s1405_s16  ;;  %p1411_p13 = scmp.lt.s32.totalorder %s1405_s16, %s1405_s16 }
  0x1e   :  { %p1412_p0 = por %p1411_p13, %p1410_p12 }
  0x20   :  { %p1413_p1 = pnand %p1412_p0, %p1406_p11 }
  0x22   :  { %1416 = shalt.err (!%p1413_p1)
}
  0x23   :  { %s1495_s1 = smov 256   ;;  %s1496_s17 = smov 16  }
  0x24   :  { %25 = dma.hbm_to_vmem [thread:$0]  %s1693_s0, 512, %s20_s8, [#allocation5], %s1495_s1, %s1495_s1, %s1496_s17  }
  0x25   :  { %s1497_s20 = smov [#allocation9]   ;;  %s1498_s22 = smov [#allocation10]  }
  0x26   :  { %s43_s21 = sshll.u32 %s1497_s20, 4  ;;  %s57_s23 = sshll.u32 %s1498_s22, 4  ;;  %s44_s21 = int_to_ptr.vmem [resolvable:$true] %s43_s21  ;;  %s1559_s23 = int_to_ptr.vmem [resolvable:$true] %s57_s23 }
  0x27   :  { %s1417_s26 = scalar_lea.hbm %s1695_s2, 6144 }
  0x28   :  { %p1418_p2 = scmp.ne.s32.totalorder %s1695_s2, %s1417_s26  ;;  %p1421_p3 = scmp.lt.u32.totalorder %s1417_s26, %s1695_s2 }
  0x2a   :  { %p1423_p4 = pnand %p1421_p3, %p1418_p2 }
  0x2c   :  { %1426 = shalt.err (!%p1423_p4)
}
  0x2d   :  { %s1427_s0 = scalar_lea.vmem %s44_s21, 6144  ;;  %p1432_p6 = scmp.lt.s32.totalorder %s44_s21, %s44_s21 }
  0x2e   :  { %p1428_p5 = scmp.ne.s32.totalorder %s44_s21, %s1427_s0  ;;  %p1433_p7 = scmp.lt.s32.totalorder %s1427_s0, %s1427_s0 }
  0x30   :  { %p1434_p8 = por %p1433_p7, %p1432_p6 }
  0x32   :  { %p1435_p9 = pnand %p1434_p8, %p1428_p5 }
  0x34   :  { %1438 = shalt.err (!%p1435_p9)
}
  0x35   :  { %49 = dma.hbm_to_vmem [thread:$0]  %s1695_s2, 6144, %s44_s21, [#allocation8], %s1492_s28, %s1492_s28, %s1493_s29  }
  0x36   :  { %s1439_s12 = scalar_lea.hbm %s1697_s4, 384 }
  0x37   :  { %p1440_p10 = scmp.ne.s32.totalorder %s1697_s4, %s1439_s12  ;;  %p1443_p11 = scmp.lt.u32.totalorder %s1439_s12, %s1697_s4 }
  0x39   :  { %p1445_p12 = pnand %p1443_p11, %p1440_p10 }
  0x3b   :  { %1448 = shalt.err (!%p1445_p12)
}
  0x3c   :  { %s1449_s1 = scalar_lea.vmem %s1559_s23, 384  ;;  %p1454_p0 = scmp.lt.s32.totalorder %s1559_s23, %s1559_s23 }
  0x3d   :  { %p1450_p13 = scmp.ne.s32.totalorder %s1559_s23, %s1449_s1  ;;  %p1455_p1 = scmp.lt.s32.totalorder %s1449_s1, %s1449_s1 }
  0x3f   :  { %p1456_p2 = por %p1455_p1, %p1454_p0 }
  0x41   :  { %p1457_p3 = pnand %p1456_p2, %p1450_p13 }
  0x43   :  { %1460 = shalt.err (!%p1457_p3)
}
  0x44   :  { %63 = dma.hbm_to_vmem [thread:$0]  %s1697_s4, 384, %s1559_s23, [#allocation11], %s1492_s28, %s1492_s28, %s1493_s29  }
  0x45   :  { %1483 = dma.done.wait [#allocation5], 512  }
  0x46   :  { %1484 = vsyncadd [#allocation5], 4294966784 }
  0x47   :  { %1485 = dma.done.wait [#allocation8], 12288  }
  0x48   :  { %1486 = vsyncadd [#allocation8], 4294955008 }
  0x49   :  { %1487 = dma.done.wait [#allocation11], 384  }
  0x4a   :  { %1488 = vsyncadd [#allocation11], 4294966912  ;;  %v1233_v0 = vld [vmem:[#allocation7 + $0x4] ss:$12 sps:$4 sm:$0xff]   ;;  %v1235_v1 = vld [vmem:[#allocation7 + $0xc8] ss:$12 sps:$4 sm:$0xff]  }
  0x4b   :  { %425 = vmatprep.subr.bf16.mxu0 %v1233_v0  ;;  %v1236_v2 = vld [vmem:[#allocation7] ss:$12 sps:$4 sm:$0xff]   ;;  %1178 = vmatprep.subr.bf16.mxu1 %v1235_v1  ;;  %v1237_v3 = vld [vmem:[#allocation7 + $0x8] ss:$12 sps:$4 sm:$0xff]   ;;  %v1241_v6 = vld [vmem:[#allocation7 + $0x18] ss:$12 sps:$4 sm:$0xff]  }
  0x4c   :  { %426 = vmatpush1.bf16.msra.mxu0 %v1236_v2  ;;  %v1238_v4 = vld [vmem:[#allocation7 + $0x1c] ss:$12 sps:$4 sm:$0xff]   ;;  %1179 = vmatpush3.bf16.msra.mxu1 %v1237_v3  ;;  %v1240_v5 = vld [vmem:[#allocation7 + $0xe0] ss:$12 sps:$4 sm:$0xff]   ;;  %v1245_v9 = vld [vmem:[#allocation7 + $0xf8] ss:$12 sps:$4 sm:$0xff]  }
  0x4d   :  { %427 = vmatprep.subr.bf16.mxu0 %v1238_v4  ;;  %v1242_v7 = vld [vmem:[#allocation7 + $0x20] ss:$12 sps:$4 sm:$0xff]   ;;  %1180 = vmatprep.subr.bf16.mxu1 %v1240_v5  ;;  %v1246_v10 = vld [vmem:[#allocation7 + $0x30] ss:$12 sps:$4 sm:$0xff]   ;;  %v1247_v11 = vld [vmem:[#allocation7 + $0x38] ss:$12 sps:$4 sm:$0xff]  }
  0x4e   :  { %v1243_v8 = vld [vmem:[#allocation7 + $0x34] ss:$12 sps:$4 sm:$0xff]   ;;  %v1248_v12 = vld [vmem:[#allocation7 + $0x4c] ss:$12 sps:$4 sm:$0xff]   ;;  %v1250_v13 = vld [vmem:[#allocation7 + $0x110] ss:$12 sps:$4 sm:$0xff]  }
  0x4f   :  { %v1251_v14 = vld [vmem:[#allocation7 + $0x48] ss:$12 sps:$4 sm:$0xff]   ;;  %v1252_v15 = vld [vmem:[#allocation7 + $0x50] ss:$12 sps:$4 sm:$0xff]   ;;  %v1256_v18 = vld [vmem:[#allocation7 + $0x60] ss:$12 sps:$4 sm:$0xff]  }
  0x50   :  { %428 = vmatpush1.bf16.msra.mxu0 %v1241_v6  ;;  %1181 = vmatpush3.bf16.msra.mxu1 %v1242_v7  ;;  %v1253_v16 = vld [vmem:[#allocation7 + $0x64] ss:$12 sps:$4 sm:$0xff]   ;;  %v1255_v17 = vld [vmem:[#allocation7 + $0x128] ss:$12 sps:$4 sm:$0xff]   ;;  %v1260_v21 = vld [vmem:[#allocation7 + $0x140] ss:$12 sps:$4 sm:$0xff]  }
  0x51   :  { %429 = vmatprep.subr.bf16.mxu0 %v1243_v8  ;;  %1182 = vmatprep.subr.bf16.mxu1 %v1245_v9  ;;  %v1257_v19 = vld [vmem:[#allocation7 + $0x68] ss:$12 sps:$4 sm:$0xff]   ;;  %v1261_v22 = vld [vmem:[#allocation7 + $0x78] ss:$12 sps:$4 sm:$0xff]   ;;  %v1262_v23 = vld [vmem:[#allocation7 + $0x80] ss:$12 sps:$4 sm:$0xff]  }
  0x52   :  { %v1258_v20 = vld [vmem:[#allocation7 + $0x7c] ss:$12 sps:$4 sm:$0xff]   ;;  %v1263_v24 = vld [vmem:[#allocation7 + $0x94] ss:$12 sps:$4 sm:$0xff]   ;;  %v1265_v25 = vld [vmem:[#allocation7 + $0x158] ss:$12 sps:$4 sm:$0xff]  }
  0x53   :  { %v1266_v26 = vld [vmem:[#allocation7 + $0x90] ss:$12 sps:$4 sm:$0xff]   ;;  %v1267_v27 = vld [vmem:[#allocation7 + $0x98] ss:$12 sps:$4 sm:$0xff]   ;;  %v1271_v30 = vld [vmem:[#allocation7 + $0xa8] ss:$12 sps:$4 sm:$0xff]  }
  0x54   :  { %430 = vmatpush1.bf16.msra.mxu0 %v1246_v10  ;;  %1183 = vmatpush3.bf16.msra.mxu1 %v1247_v11  ;;  %v1268_v28 = vld [vmem:[#allocation7 + $0xac] ss:$12 sps:$4 sm:$0xff]   ;;  %v1270_v29 = vld [vmem:[#allocation7 + $0x170] ss:$12 sps:$4 sm:$0xff]   ;;  %v1596_v36 = vld [vmem:[#allocation4] sm:$0xff] }
  0x55   :  { %431 = vmatprep.subr.bf16.mxu0 %v1248_v12  ;;  %1184 = vmatprep.subr.bf16.mxu1 %v1250_v13  ;;  %v94_v31 = vld [vmem:[#allocation4 + $0x8] sm:$0xff]  ;;  %v96_v32 = vld [vmem:[#allocation4 + $0x18] sm:$0xff]  ;;  %v1273_v35 = vld [vmem:[#allocation7 + $0xc4] ss:$12 sps:$4 sm:$0xff]  }
  0x56   :  { %v1272_v33 = vld [vmem:[#allocation7 + $0xb0] ss:$12 sps:$4 sm:$0xff]   ;;  %v104_v34 = vpack.c.bf16 %v96_v32, %v94_v31  ;;  %v528_v38 = vmul.f32 %v94_v31, %v94_v31  ;;  %v530_v39 = vmul.f32 %v96_v32, %v96_v32  ;;  %v1275_v42 = vld [vmem:[#allocation9] ss:$12 sps:$4 sm:$0xff]   ;;  %v1281_v47 = vld [vmem:[#allocation9 + $0x18] ss:$12 sps:$4 sm:$0xff]  }
  0x57   :  { %v1598_v37 = vld [vmem:[#allocation4 + $0x10] sm:$0xff]  ;;  %v1278_v43 = vld [vmem:[#allocation7 + $0xc0] ss:$12 sps:$4 sm:$0xff]   ;;  %v1279_v44 = vld [vmem:[#allocation7 + $0xdc] ss:$12 sps:$4 sm:$0xff]  }
  0x58   :  { %432 = vmatpush1.bf16.msra.mxu0 %v1251_v14  ;;  %1185 = vmatpush3.bf16.msra.mxu1 %v1252_v15  ;;  %v1277_v40 = vld [vmem:[#allocation9 + $0x4] ss:$12 sps:$4 sm:$0xff]   ;;  %v1602_v41 = vpack.c.bf16 %v1598_v37, %v1596_v36  ;;  %v1283_v45 = vld [vmem:[#allocation9 + $0x1c] ss:$12 sps:$4 sm:$0xff]   ;;  %v1604_v46 = vpack.c.bf16 %v530_v39, %v528_v38  ;;  %v1285_v49 = vld [vmem:[#allocation7 + $0xf4] ss:$12 sps:$4 sm:$0xff]  }
  0x59   :  { %433 = vmatprep.subr.bf16.mxu0 %v1253_v16  ;;  %1186 = vmatprep.subr.bf16.mxu1 %v1255_v17  ;;  %v1284_v48 = vld [vmem:[#allocation7 + $0xd8] ss:$12 sps:$4 sm:$0xff]   ;;  %v1289_v50 = vld [vmem:[#allocation9 + $0x34] ss:$12 sps:$4 sm:$0xff]   ;;  %v1287_v51 = vld [vmem:[#allocation9 + $0x30] ss:$12 sps:$4 sm:$0xff]  }
  0x5a   :  { %500 = vmatprep.mubr.bf16.mxu1 %v104_v34  ;;  %457 = vmatprep.mubr.bf16.mxu0 %v104_v34  ;;  %v1290_v52 = vld [vmem:[#allocation7 + $0xf0] ss:$12 sps:$4 sm:$0xff]   ;;  %v1291_v53 = vld [vmem:[#allocation7 + $0x10c] ss:$12 sps:$4 sm:$0xff]   ;;  %v1293_v55 = vld [vmem:[#allocation9 + $0x48] ss:$12 sps:$4 sm:$0xff]  }
  0x5b   :  { %v1295_v54 = vld [vmem:[#allocation9 + $0x4c] ss:$12 sps:$4 sm:$0xff]   ;;  %v1296_v56 = vld [vmem:[#allocation7 + $0x108] ss:$12 sps:$4 sm:$0xff]   ;;  %v1297_v57 = vld [vmem:[#allocation7 + $0x124] ss:$12 sps:$4 sm:$0xff]  }
  0x5c   :  { %434 = vmatpush1.bf16.msra.mxu0 %v1256_v18  ;;  %1187 = vmatpush3.bf16.msra.mxu1 %v1257_v19  ;;  %v1301_v58 = vld [vmem:[#allocation9 + $0x64] ss:$12 sps:$4 sm:$0xff]   ;;  %v1299_v59 = vld [vmem:[#allocation9 + $0x60] ss:$12 sps:$4 sm:$0xff]   ;;  %v1303_v61 = vld [vmem:[#allocation7 + $0x13c] ss:$12 sps:$4 sm:$0xff]  }
  0x5d   :  { %435 = vmatprep.subr.bf16.mxu0 %v1258_v20  ;;  %1188 = vmatprep.subr.bf16.mxu1 %v1260_v21  ;;  %v1302_v60 = vld [vmem:[#allocation7 + $0x120] ss:$12 sps:$4 sm:$0xff]   ;;  %v1307_v62 = vld [vmem:[#allocation9 + $0x7c] ss:$12 sps:$4 sm:$0xff]   ;;  %v1308_v63 = vld [vmem:[#allocation7 + $0x138] ss:$12 sps:$4 sm:$0xff]  }
  0x5e   :  { %v1305_v0 = vld [vmem:[#allocation9 + $0x78] ss:$12 sps:$4 sm:$0xff]   ;;  %v1309_v1 = vld [vmem:[#allocation7 + $0x154] ss:$12 sps:$4 sm:$0xff]   ;;  %v1311_v3 = vld [vmem:[#allocation9 + $0x90] ss:$12 sps:$4 sm:$0xff]  }
  0x5f   :  { %v1313_v2 = vld [vmem:[#allocation9 + $0x94] ss:$12 sps:$4 sm:$0xff]   ;;  %v1314_v4 = vld [vmem:[#allocation7 + $0x150] ss:$12 sps:$4 sm:$0xff]   ;;  %v1315_v5 = vld [vmem:[#allocation7 + $0x16c] ss:$12 sps:$4 sm:$0xff]  }
  0x60   :  { %436 = vmatpush1.bf16.msra.mxu0 %v1261_v22  ;;  %1189 = vmatpush3.bf16.msra.mxu1 %v1262_v23  ;;  %v1319_v6 = vld [vmem:[#allocation9 + $0xac] ss:$12 sps:$4 sm:$0xff]   ;;  %v1317_v7 = vld [vmem:[#allocation9 + $0xa8] ss:$12 sps:$4 sm:$0xff]   ;;  %v1323_v10 = vld [vmem:[#allocation9 + $0xc4] ss:$12 sps:$4 sm:$0xff]  }
  0x61   :  { %437 = vmatprep.subr.bf16.mxu0 %v1263_v24  ;;  %1190 = vmatprep.subr.bf16.mxu1 %v1265_v25  ;;  %v1320_v8 = vld [vmem:[#allocation7 + $0x168] ss:$12 sps:$4 sm:$0xff]   ;;  %v1321_v11 = vld [vmem:[#allocation9 + $0xc0] ss:$12 sps:$4 sm:$0xff]   ;;  %v1326_v15 = vld [vmem:[#allocation9 + $0xd8] ss:$12 sps:$4 sm:$0xff]  }
  0x62   :  { %v1324_v9 = vld [vmem:[#allocation9 + $0xc8] ss:$12 sps:$4 sm:$0xff]   ;;  %v1329_v13 = vld [vmem:[#allocation9 + $0xe0] ss:$12 sps:$4 sm:$0xff]   ;;  %v1334_v17 = vld [vmem:[#allocation9 + $0xf8] ss:$12 sps:$4 sm:$0xff]  }
  0x63   :  { %v1325_v12 = vld [vmem:[#allocation9 + $0x8] ss:$12 sps:$4 sm:$0xff]   ;;  %v1330_v16 = vld [vmem:[#allocation9 + $0x20] ss:$12 sps:$4 sm:$0xff]   ;;  %v1335_v19 = vld [vmem:[#allocation9 + $0x38] ss:$12 sps:$4 sm:$0xff]  }
  0x64   :  { %438 = vmatpush1.bf16.msra.mxu0 %v1266_v26  ;;  %1191 = vmatpush3.bf16.msra.mxu1 %v1267_v27  ;;  %v1328_v14 = vld [vmem:[#allocation9 + $0xdc] ss:$12 sps:$4 sm:$0xff]   ;;  %v1333_v18 = vld [vmem:[#allocation9 + $0xf4] ss:$12 sps:$4 sm:$0xff]   ;;  %v1338_v22 = vld [vmem:[#allocation9 + $0x10c] ss:$12 sps:$4 sm:$0xff]  }
  0x65   :  { %439 = vmatprep.subr.bf16.mxu0 %v1268_v28  ;;  %1192 = vmatprep.subr.bf16.mxu1 %v1270_v29  ;;  %v1331_v20 = vld [vmem:[#allocation9 + $0xf0] ss:$12 sps:$4 sm:$0xff]   ;;  %v1336_v24 = vld [vmem:[#allocation9 + $0x108] ss:$12 sps:$4 sm:$0xff]   ;;  %v1341_v28 = vld [vmem:[#allocation9 + $0x120] ss:$12 sps:$4 sm:$0xff]  }
  0x66   :  { %v1339_v21 = vld [vmem:[#allocation9 + $0x110] ss:$12 sps:$4 sm:$0xff]   ;;  %v1344_v25 = vld [vmem:[#allocation9 + $0x128] ss:$12 sps:$4 sm:$0xff]   ;;  %v1349_v29 = vld [vmem:[#allocation9 + $0x140] ss:$12 sps:$4 sm:$0xff]  }
  0x67   :  { %v1340_v23 = vld [vmem:[#allocation9 + $0x50] ss:$12 sps:$4 sm:$0xff]   ;;  %v1345_v27 = vld [vmem:[#allocation9 + $0x68] ss:$12 sps:$4 sm:$0xff]   ;;  %v1350_v31 = vld [vmem:[#allocation9 + $0x80] ss:$12 sps:$4 sm:$0xff]  }
  0x68   :  { %440 = vmatpush1.bf16.msra.mxu0 %v1271_v30  ;;  %1193 = vmatpush3.bf16.msra.mxu1 %v1272_v33  ;;  %v1343_v26 = vld [vmem:[#allocation9 + $0x124] ss:$12 sps:$4 sm:$0xff]   ;;  %v1348_v30 = vld [vmem:[#allocation9 + $0x13c] ss:$12 sps:$4 sm:$0xff]   ;;  %v1353_v34 = vld [vmem:[#allocation9 + $0x154] ss:$12 sps:$4 sm:$0xff]  }
  0x69   :  { %441 = vmatprep.subr.bf16.mxu0 %v1273_v35  ;;  %853 = vmatprep.subr.bf16.mxu1 %v1277_v40  ;;  %v1346_v32 = vld [vmem:[#allocation9 + $0x138] ss:$12 sps:$4 sm:$0xff]   ;;  %v1351_v38 = vld [vmem:[#allocation9 + $0x150] ss:$12 sps:$4 sm:$0xff]  }
  0x6a   :  { %v1354_v33 = vld [vmem:[#allocation9 + $0x158] ss:$12 sps:$4 sm:$0xff]   ;;  %v1359_v39 = vld [vmem:[#allocation9 + $0x170] ss:$12 sps:$4 sm:$0xff]  }
  0x6b   :  { %501 = vmatmul.mubr.bf16.vlgmr.msra.gmra.mrb[0].mxu1 %v1602_v41  ;;  %v1355_v35 = vld [vmem:[#allocation9 + $0x98] ss:$12 sps:$4 sm:$0xff]  }
  0x6c   :  { %442 = vmatpush1.bf16.msra.mxu0 %v1278_v43  ;;  %854 = vmatpush1.bf16.msra.mxu1 %v1275_v42  ;;  %v1358_v40 = vld [vmem:[#allocation9 + $0x16c] ss:$12 sps:$4 sm:$0xff]   ;;  %v529_v42 = vmul.f32 %v1598_v37, %v1598_v37  ;;  %v1360_v43 = vld [vmem:[#allocation9 + $0xb0] ss:$12 sps:$4 sm:$0xff]  }
  0x6d   :  { %443 = vmatprep.subr.bf16.mxu0 %v1279_v44  ;;  %855 = vmatprep.subr.bf16.mxu1 %v1283_v45  ;;  %v1356_v44 = vld [vmem:[#allocation9 + $0x168] ss:$12 sps:$4 sm:$0xff]  }
  0x6e   :  { %885 = vmatprep.mubr.bf16.mxu1 %v1604_v46 }
  0x70   :  { %444 = vmatpush1.bf16.msra.mxu0 %v1284_v48  ;;  %856 = vmatpush1.bf16.msra.mxu1 %v1281_v47 }
  0x71   :  { %445 = vmatprep.subr.bf16.mxu0 %v1285_v49  ;;  %857 = vmatprep.subr.bf16.mxu1 %v1289_v50 }
  0x74   :  { %446 = vmatpush1.bf16.msra.mxu0 %v1290_v52  ;;  %858 = vmatpush1.bf16.msra.mxu1 %v1287_v51 }
  0x75   :  { %447 = vmatprep.subr.bf16.mxu0 %v1291_v53  ;;  %859 = vmatprep.subr.bf16.mxu1 %v1295_v54 }
  0x78   :  { %448 = vmatpush1.bf16.msra.mxu0 %v1296_v56  ;;  %860 = vmatpush1.bf16.msra.mxu1 %v1293_v55  ;;  %v1036_v56 = vlaneseq }
  0x79   :  { %449 = vmatprep.subr.bf16.mxu0 %v1297_v57  ;;  %861 = vmatprep.subr.bf16.mxu1 %v1301_v58 }
  0x7c   :  { %450 = vmatpush1.bf16.msra.mxu0 %v1302_v60  ;;  %862 = vmatpush1.bf16.msra.mxu1 %v1299_v59 }
  0x7d   :  { %451 = vmatprep.subr.bf16.mxu0 %v1303_v61  ;;  %863 = vmatprep.subr.bf16.mxu1 %v1307_v62 }
  0x80   :  { %452 = vmatpush1.bf16.msra.mxu0 %v1308_v63  ;;  %864 = vmatpush1.bf16.msra.mxu1 %v1305_v0 }
  0x81   :  { %453 = vmatprep.subr.bf16.mxu0 %v1309_v1  ;;  %865 = vmatprep.subr.bf16.mxu1 %v1313_v2  ;;  %v1037_v2 = vshrl.u32 %v1036_v56, 7 }
  0x84   :  { %454 = vmatpush1.bf16.msra.mxu0 %v1314_v4  ;;  %866 = vmatpush1.bf16.msra.mxu1 %v1311_v3 }
  0x85   :  { %455 = vmatprep.subr.bf16.mxu0 %v1315_v5  ;;  %867 = vmatprep.subr.bf16.mxu1 %v1319_v6 }
  0x88   :  { %456 = vmatpush1.bf16.msra.mxu0 %v1320_v8  ;;  %868 = vmatpush1.bf16.msra.mxu1 %v1317_v7  ;;  %v1006_v7 = vld [vmem:[#allocation10] sm:$0xff]  ;;  %v1038_v8 = vsub.s32 0, %v1037_v2 }
  0x89   :  { %1200 = vmatprep.subr.bf16.mxu0 %v1324_v9  ;;  %869 = vmatprep.subr.bf16.mxu1 %v1323_v10  ;;  %v1034_v9 = vld [vmem:[%s1696_s3] sm:$0x7]  ;;  %v1042_v10 = vsub.s32 1, %v1037_v2  ;;  %s1499_s3 = smov [#allocation12]  }
  0x8a   :  { %s1068_s29 = sshll.u32 %s1499_s3, 4  ;;  %s1069_s29 = int_to_ptr.vmem [resolvable:$true] %s1068_s29 }
  0x8b   :  { %458 = vmatmul.mubr.bf16.vlgmr.msra.gmra.mrb[0].mxu0 %v1602_v41  ;;  %v527_v41 = vmul.f32 %v1596_v36, %v1596_v36  ;;  %s1461_s18 = scalar_lea.vmem %s1069_s29, 768  ;;  %p1466_p5 = scmp.lt.s32.totalorder %s1069_s29, %s1069_s29 }
  0x8c   :  { %1201 = vmatpush3.bf16.msra.mxu0 %v1325_v12  ;;  %928 = vmatprep.mubr.bf16.mxu0 %v1604_v46  ;;  %v1046_v12 = vsub.s32 2, %v1037_v2  ;;  %p1462_p4 = scmp.ne.s32.totalorder %s1069_s29, %s1461_s18  ;;  %p1467_p6 = scmp.lt.s32.totalorder %s1461_s18, %s1461_s18 }
  0x8d   :  { %870 = vmatpush1.bf16.msra.mxu1 %v1321_v11  ;;  %1202 = vmatprep.subr.bf16.mxu0 %v1329_v13  ;;  %v531_v45 = vpack.c.bf16 %v529_v42, %v527_v41  ;;  %v1634_v11 = vld [vmem:[#allocation10 + $0x8] ss:$12 sps:$4 sm:$0xff]   ;;  %v1008_v13 = vld [vmem:[#allocation10 + $0xc] sm:$0xff] }
  0x8e   :  { %871 = vmatprep.subr.bf16.mxu1 %v1328_v14  ;;  %p1468_p7 = por %p1467_p6, %p1466_p5 }
  0x90   :  { %1203 = vmatpush3.bf16.msra.mxu0 %v1330_v16  ;;  %v1639_v16 = vrot.slane %v1034_v9, %v1038_v8  ;;  %p1469_p8 = pnand %p1468_p7, %p1462_p4 }
  0x91   :  { %872 = vmatpush1.bf16.msra.mxu1 %v1326_v15  ;;  %1204 = vmatprep.subr.bf16.mxu0 %v1334_v17  ;;  %v1010_v15 = vunpack.c.l.bf16 %v1006_v7  ;;  %v1011_v17 = vunpack.c.h.bf16 %v1006_v7 }
  0x92   :  { %873 = vmatprep.subr.bf16.mxu1 %v1333_v18  ;;  %v1012_v18 = vunpack.c.l.bf16 %v1634_v11 }
  0x94   :  { %1205 = vmatpush3.bf16.msra.mxu0 %v1335_v19 }
  0x95   :  { %874 = vmatpush1.bf16.msra.mxu1 %v1331_v20  ;;  %1206 = vmatprep.subr.bf16.mxu0 %v1339_v21  ;;  %v1643_v20 = vrot.slane %v1034_v9, %v1042_v10  ;;  %v1645_v21 = vrot.slane %v1034_v9, %v1046_v12 }
  0x96   :  { %875 = vmatprep.subr.bf16.mxu1 %v1338_v22  ;;  %v1013_v22 = vunpack.c.l.bf16 %v1008_v13 }
  0x98   :  { %1207 = vmatpush3.bf16.msra.mxu0 %v1340_v23  ;;  %v1014_v23 = vunpack.c.h.bf16 %v1008_v13 }
  0x99   :  { %876 = vmatpush1.bf16.msra.mxu1 %v1336_v24  ;;  %1208 = vmatprep.subr.bf16.mxu0 %v1344_v25 }
  0x9a   :  { %877 = vmatprep.subr.bf16.mxu1 %v1343_v26  ;;  %v1015_v26 = vunpack.c.h.bf16 %v1634_v11 }
  0x9c   :  { %1209 = vmatpush3.bf16.msra.mxu0 %v1345_v27 }
  0x9d   :  { %878 = vmatpush1.bf16.msra.mxu1 %v1341_v28  ;;  %1210 = vmatprep.subr.bf16.mxu0 %v1349_v29 }
  0x9e   :  { %879 = vmatprep.subr.bf16.mxu1 %v1348_v30 }
  0xa0   :  { %1211 = vmatpush3.bf16.msra.mxu0 %v1350_v31 }
  0xa1   :  { %880 = vmatpush1.bf16.msra.mxu1 %v1346_v32  ;;  %1212 = vmatprep.subr.bf16.mxu0 %v1354_v33 }
  0xa2   :  { %881 = vmatprep.subr.bf16.mxu1 %v1353_v34 }
  0xa4   :  { %1213 = vmatpush3.bf16.msra.mxu0 %v1355_v35 }
  0xa5   :  { %882 = vmatpush1.bf16.msra.mxu1 %v1351_v38  ;;  %1214 = vmatprep.subr.bf16.mxu0 %v1359_v39 }
  0xa6   :  { %883 = vmatprep.subr.bf16.mxu1 %v1358_v40 }
  0xa8   :  { %1215 = vmatpush3.bf16.msra.mxu0 %v1360_v43 }
  0xa9   :  { %884 = vmatpush1.bf16.msra.mxu1 %v1356_v44 }
  0xab   :  { %929 = vmatmul.mubr.bf16.vlgmr.msra.gmra.mrb[4].mxu0 %v531_v45 }
  0xac   :  { %886 = vmatmul.mubr.bf16.vlgmr.msra.gmra.mrb[4].mxu1 %v531_v45 }
 0x13e   :  { %v1194_v46 = vpop.f32.mrb[0].mxu1 }
 0x13f   :  { %v1195_v47 = vpop.f32.mrb[1].mxu1 }
 0x140   :  { %v1614_v48 = vadd.f32 %v1195_v47, %v1194_v46  ;;  %v1197_v49 = vpop.f32.mrb[2].mxu1 }
 0x141   :  { %v1198_v36 = vpop.f32.mrb[3].mxu1 }
 0x142   :  { %v1616_v50 = vadd.f32 %v1198_v36, %v1197_v49 }
 0x15e   :  { %v1618_v37 = vpop.f32.mrb[0].mxu0 }
 0x15f   :  { %v1620_v51 = vpop.f32.mrb[1].mxu0 }
 0x160   :  { %v1622_v52 = vpop.f32.mrb[2].mxu0 }
 0x161   :  { %v1624_v53 = vpop.f32.mrb[3].mxu0 }
 0x17e   :  { %v1216_v54 = vpop.f32.mrb[4].mxu0 }
 0x17f   :  { %v887_v55 = vpop.f32.mrb[4].mxu1  ;;  %v1217_v57 = vpop.f32.mrb[5].mxu0 }
 0x180   :  { %v958_v58 = vadd.f32 1e-06, %v887_v55  ;;  %v889_v59 = vpop.f32.mrb[5].mxu1  ;;  %v1218_v60 = vadd.f32 %v1217_v57, %v1216_v54  ;;  %v1219_v61 = vpop.f32.mrb[6].mxu0 }
 0x181   :  { %v959_v62 = vadd.f32 1e-06, %v889_v59  ;;  %v891_v63 = vpop.f32.mrb[6].mxu1  ;;  %v1220_v0 = vpop.f32.mrb[7].mxu0 }
 0x182   :  { %1361 = vrsqrt.f32 %v958_v58  ;;  %v893_v1 = vpop.f32.mrb[7].mxu1  ;;  %v960_v3 = vadd.f32 1e-06, %v1218_v60  ;;  %v1626_v4 = vadd.f32 1e-06, %v891_v63  ;;  %v1221_v6 = vadd.f32 %v1220_v0, %v1219_v61 }
 0x183   :  { %1363 = vrsqrt.f32 %v959_v62  ;;  %v1628_v5 = vadd.f32 1e-06, %v893_v1  ;;  %vm966_vm0 = vcmp.eq.f32.partialorder %v958_v58, inf  ;;  %vm968_vm1 = vcmp.eq.f32.partialorder %v958_v58, 0.0 }
 0x184   :  { %1365 = vrsqrt.f32 %v960_v3  ;;  %v1637_v14 = vadd.f32 1e-06, %v1221_v6  ;;  %v969_v27 = vand.u32 2147483648, %v958_v58  ;;  %vm973_vm2 = vcmp.eq.f32.partialorder %v959_v62, inf }
 0x185   :  { %1367 = vrsqrt.f32 %v1626_v4  ;;  %vm975_vm3 = vcmp.eq.f32.partialorder %v959_v62, 0.0  ;;  %v976_v30 = vand.u32 2147483648, %v959_v62  ;;  %vm980_vm4 = vcmp.eq.f32.partialorder %v960_v3, inf }
 0x186   :  { %1369 = vrsqrt.f32 %v1628_v5  ;;  %vm982_vm5 = vcmp.eq.f32.partialorder %v960_v3, 0.0  ;;  %v983_v34 = vand.u32 2147483648, %v960_v3  ;;  %vm987_vm6 = vcmp.eq.f32.partialorder %v1626_v4, inf }
 0x187   :  { %1371 = vrsqrt.f32 %v1637_v14  ;;  %vm989_vm7 = vcmp.eq.f32.partialorder %v1626_v4, 0.0  ;;  %v990_v44 = vand.u32 2147483648, %v1626_v4  ;;  %vm994_vm8 = vcmp.eq.f32.partialorder %v1628_v5, inf }
 0x188   :  { %vm996_vm9 = vcmp.eq.f32.partialorder %v1628_v5, 0.0  ;;  %v997_v55 = vand.u32 2147483648, %v1628_v5  ;;  %vm1001_vm10 = vcmp.eq.f32.partialorder %v1637_v14, inf  ;;  %v1004_v1 = vand.u32 2147483648, %v1637_v14 }
 0x189   :  { %vm1003_vm11 = vcmp.eq.f32.partialorder %v1637_v14, 0.0 }
 0x18c   :  { %v1362_v19 = vpop.eup %1361 }
 0x18d   :  { %v1364_v24 = vpop.eup %1363  ;;  %v965_v25 = vmul.f32 %v1362_v19, %v958_v58 }
 0x18e   :  { %v972_v28 = vmul.f32 %v1364_v24, %v959_v62  ;;  %v1366_v31 = vpop.eup %1365 }
 0x18f   :  { %v967_v29 = vsel %vm966_vm0, %v958_v58, %v965_v25  ;;  %v1368_v35 = vpop.eup %1367  ;;  %v979_v40 = vmul.f32 %v1366_v31, %v960_v3 }
 0x190   :  { %v970_v32 = vsel %vm968_vm1, %v969_v27, %v967_v29  ;;  %v974_v33 = vsel %vm973_vm2, %v959_v62, %v972_v28  ;;  %v1370_v41 = vpop.eup %1369  ;;  %v986_v43 = vmul.f32 %v1368_v35, %v1626_v4 }
 0x191   :  { %v1016_v38 = vmul.f32 %v1010_v15, %v970_v32  ;;  %v977_v39 = vsel %vm975_vm3, %v976_v30, %v974_v33  ;;  %v981_v46 = vsel %vm980_vm4, %v960_v3, %v979_v40  ;;  %v993_v47 = vmul.f32 %v1370_v41, %v1628_v5  ;;  %v1372_v56 = vpop.eup %1371 }
 0x192   :  { %v1017_v42 = vmul.f32 %v1011_v17, %v977_v39  ;;  %v984_v36 = vsel %vm982_vm5, %v983_v34, %v981_v46  ;;  %v988_v54 = vsel %vm987_vm6, %v1626_v4, %v986_v43  ;;  %v1000_v62 = vmul.f32 %v1372_v56, %v1637_v14 }
 0x193   :  { %v1028_v45 = vadd.f32 %v1016_v38, %v1618_v37  ;;  %v1018_v37 = vmul.f32 %v1012_v18, %v984_v36  ;;  %v991_v58 = vsel %vm989_vm7, %v990_v44, %v988_v54  ;;  %v995_v59 = vsel %vm994_vm8, %v1628_v5, %v993_v47 }
 0x194   :  { %v1029_v49 = vadd.f32 %v1017_v42, %v1620_v51  ;;  %v1019_v51 = vmul.f32 %v1013_v22, %v991_v58  ;;  %v998_v61 = vsel %vm996_vm9, %v997_v55, %v995_v59  ;;  %v1002_v3 = vsel %vm1001_vm10, %v1637_v14, %v1000_v62 }
 0x195   :  { %v1051_v57 = vadd.f32 %v1639_v16, %v1028_v45  ;;  %v1030_v63 = vadd.f32 %v1614_v48, %v1018_v37  ;;  %v1020_v0 = vmul.f32 %v1014_v23, %v998_v61  ;;  %v1005_v6 = vsel %vm1003_vm11, %v1004_v1, %v1002_v3 }
 0x196   :  { %v1052_v60 = vadd.f32 %v1643_v20, %v1029_v49  ;;  %v1031_v2 = vadd.f32 %v1019_v51, %v1622_v52  ;;  %v1021_v48 = vmul.f32 %v1015_v26, %v1005_v6 }
 0x197   :  { %1057 = vst [vmem:[#allocation12] sm:$0xff] %v1051_v57  ;;  %v1053_v4 = vadd.f32 %v1645_v21, %v1030_v63  ;;  %v1032_v5 = vadd.f32 %v1020_v0, %v1624_v53 }
 0x198   :  { %1058 = vst [vmem:[#allocation12 + $0x8] sm:$0xff] %v1052_v60  ;;  %v1054_v7 = vadd.f32 %v1639_v16, %v1031_v2  ;;  %v1033_v52 = vadd.f32 %v1616_v50, %v1021_v48 }
 0x199   :  { %1059 = vst [vmem:[#allocation12 + $0x10] sm:$0xff] %v1053_v4  ;;  %v1055_v8 = vadd.f32 %v1643_v20, %v1032_v5 }
 0x19a   :  { %1060 = vst [vmem:[#allocation12 + $0x18] sm:$0xff] %v1054_v7  ;;  %v1056_v9 = vadd.f32 %v1645_v21, %v1033_v52 }
 0x19b   :  { %1061 = vst [vmem:[#allocation12 + $0x20] sm:$0xff] %v1055_v8 }
 0x19c   :  { %1062 = vst [vmem:[#allocation12 + $0x28] sm:$0xff] %v1056_v9 }
 0x19d   :  { %1472 = shalt.err (!%p1469_p8)
}
 0x19e   :  { %s1473_s21 = scalar_lea.hbm %s1698_s5, 768 }
 0x19f   :  { %p1474_p9 = scmp.ne.s32.totalorder %s1698_s5, %s1473_s21  ;;  %p1477_p10 = scmp.lt.u32.totalorder %s1473_s21, %s1698_s5 }
 0x1a1   :  { %p1479_p11 = pnand %p1477_p10, %p1474_p9 }
 0x1a3   :  { %1482 = shalt.err (!%p1479_p11)
}
 0x1a4   :  { %s1500_s26 = smov 384   ;;  %s1501_s27 = smov 24  }
 0x1a5   :  { %1074 = dma.vmem_to_hbm [thread:$0]  %s1069_s29, 768, %s1698_s5, [#allocation6], %s1500_s26, %s1500_s26, %s1501_s27  }
 0x1a6   :  { %1489 = dma.done.wait [#allocation6], 768  }
 0x1a7   :  { %1490 = vsyncadd [#allocation6], 4294966528 }
 0x1a8   :  { %1078 = vsyncpa [#allocation5], 1 }
 0x1a9   :  { %1079 = vsyncpa [#allocation8], 1 }
 0x1aa   :  { %1080 = vsyncpa [#allocation11], 1 }
 0x1ab   :  { %1081 = vsyncpa [#allocation6], 1 }

</bundles_post_ra>
